<compile_context>
chip_gen: v5e
topology: v5e:2x2
jax: 0.10.0
libtpu: 0.0.40
codegen_flags: <defaults>
</compile_context>

<pallas_src>
import functools

import jax
import jax.numpy as jnp
import numpy as np
from jax.experimental import pallas as pl
from jax.experimental.pallas import tpu as pltpu

COMPUTE_DTYPE = jnp.bfloat16        # MXU operand / history-window dtype


def _round_up(x, m):
    return ((x + m - 1) // m) * m


# ----------------------------- Pallas kernel --------------------------------

def _tcn_kernel(*refs, layer_meta, group_meta, k, tl):
    """Whole TCN forward for one (batch row, L-tile) block.

    refs = x, (w0, b0, ..., w_{n-1}, b_{n-1}), (wd, bd per downsampled group),
           o, (win0, ..., win_{n-1})
    layer_meta[l] = (cin, cout, dilation, hpad)  (static ints)
    group_meta[g] = (first_layer_idx, has_downsample)
    """
    n_layers = len(layer_meta)
    x_ref = refs[0]
    w_refs = [refs[1 + 2 * i] for i in range(n_layers)]
    b_refs = [refs[2 + 2 * i] for i in range(n_layers)]
    pos = 1 + 2 * n_layers
    ds_refs = []
    for (_start, has_ds) in group_meta:
        if has_ds:
            ds_refs.append((refs[pos], refs[pos + 1]))
            pos += 2
        else:
            ds_refs.append(None)
    o_ref = refs[pos]
    win_refs = list(refs[pos + 1: pos + 1 + n_layers])

    t = pl.program_id(1)                       # L-tile index (sequential axis)
    h = x_ref[0].astype(jnp.float32)           # (C0, TL) f32

    for g, (start_l, _has_ds) in enumerate(group_meta):
        x_res = h                              # group input (f32) for residual
        for l in range(start_l, start_l + 3):
            cin, cout, d, hpad = layer_meta[l]
            hist = (k - 1) * d                 # causal receptive history (lanes)
            win = win_refs[l]                  # VMEM (cin, hpad + tl), bf16

            if hist > 0:
                @pl.when(t == 0)
                def _init(win=win, cin=cin, hpad=hpad):
                    # causal left zero padding for the first tile of this row
                    win[:, 0:hpad] = jnp.zeros((cin, hpad), win.dtype)

                @pl.when(t > 0)
                def _carry(win=win, hpad=hpad, hist=hist):
                    # carry the last `hist` lanes of the stream (value
                    # semantics: correct even when hist > tl and ranges overlap)
                    win[:, hpad - hist:hpad] = win[:, hpad - hist + tl:hpad + tl]

            # store the current tile once, in bf16, lane-aligned
            win[:, hpad:hpad + tl] = h.astype(win.dtype)

            # k dilated taps = lane-shifted slices of the window; one dot with
            # contraction K = k*cin (lane-dense N = tl).
            taps = [win[:, hpad - (k - 1 - j) * d: hpad - (k - 1 - j) * d + tl]
                    for j in range(k)]
            m = taps[0] if k == 1 else jnp.concatenate(taps, axis=0)
            y = jnp.dot(w_refs[l][...], m, preferred_element_type=jnp.float32)
            h = jnp.maximum(y + b_refs[l][...], 0.0)     # (cout, tl) f32
            # TODO(synk): nn.Dropout is modeled as identity (inference mode).

        if ds_refs[g] is not None:             # 1x1 conv on the residual path
            wd_ref, bd_ref = ds_refs[g]
            res = jnp.dot(wd_ref[...], x_res.astype(wd_ref.dtype),
                          preferred_element_type=jnp.float32) + bd_ref[...]
        else:
            res = x_res
        h = jnp.maximum(h + res, 0.0)

    o_ref[0] = h.astype(o_ref.dtype)


# ----------------------------- wrapper ---------------------------------------

def _pick_tile(L, tl_target):
    """Largest multiple of 128 that divides L and is <= tl_target (else L)."""
    if L % 128 == 0:
        t = max(128, min((tl_target // 128) * 128, L))
        while L % t != 0:
            t -= 128
        return t
    return L   # ragged/short sequence: one full-length block (still valid)


def tcn_forward(x, groups, *, kernel_size, tl=512):
    """x: (B, C0, L) float32 -> (B, C_last, L) float32 (PyTorch Conv1d layout)."""
    B, C0, L = x.shape
    k = kernel_size
    TL = _pick_tile(L, tl)
    nT = L // TL

    layer_meta = []
    group_meta = []
    args = [x]
    in_specs = [pl.BlockSpec((1, C0, TL), lambda b, t: (b, 0, t))]

    # conv-layer operands: weight (Cout, Cin, k) [PyTorch layout] -> flattened
    # (Cout, k*Cin) bf16 with column j*Cin+ci == w[:, ci, j]; bias -> (Cout,1) f32
    cin = C0
    li = 0
    for g in groups:
        group_meta.append((li, g["downsample"] is not None))
        for layer in g["layers"]:
            w = layer["w"]
            cout = w.shape[0]
            assert w.shape == (cout, cin, k), "conv weight must be (Cout, Cin, k)"
            w_flat = jnp.transpose(w, (0, 2, 1)).reshape(cout, k * cin)
            b2 = layer["b"].reshape(cout, 1).astype(jnp.float32)
            d = layer["dilation"]
            hpad = _round_up((k - 1) * d, 128)
            layer_meta.append((cin, cout, d, hpad))
            args += [w_flat.astype(COMPUTE_DTYPE), b2]
            in_specs += [pl.BlockSpec(w_flat.shape, lambda b, t: (0, 0)),
                         pl.BlockSpec(b2.shape, lambda b, t: (0, 0))]
            cin = cout
            li += 1

    # downsample operands (1x1 conv on the group input), in group order
    for g in groups:
        if g["downsample"] is not None:
            wd = g["downsample"]["w"].astype(COMPUTE_DTYPE)        # (Cout_g, Cin_g)
            bd = g["downsample"]["b"].reshape(-1, 1).astype(jnp.float32)
            args += [wd, bd]
            in_specs += [pl.BlockSpec(wd.shape, lambda b, t: (0, 0)),
                         pl.BlockSpec(bd.shape, lambda b, t: (0, 0))]

    C_last = layer_meta[-1][1]

    # per-layer streaming history window (bf16), history padded to 128 lanes
    scratch = [pltpu.VMEM((cm[0], cm[3] + TL), COMPUTE_DTYPE) for cm in layer_meta]
    win_bytes = sum(cm[0] * (cm[3] + TL) * 2 for cm in layer_meta)
    if win_bytes > 24 * 1024 * 1024:
        raise ValueError(
            f"streaming history windows need {win_bytes / 2**20:.1f} MiB VMEM; "
            f"reduce tl (currently {TL}) or the network depth")

    kern = functools.partial(_tcn_kernel, layer_meta=tuple(layer_meta),
                             group_meta=tuple(group_meta), k=k, tl=TL)
    # TODO(synk): for B == 1 on v7x, add an explicit 2-way L split so both
    # TensorCores get work (needs per-half re-seeding of the causal halo).
    return pl.pallas_call(
        kern,
        out_shape=jax.ShapeDtypeStruct((B, C_last, L), jnp.float32),
        grid=(B, nT),
        in_specs=in_specs,
        out_specs=pl.BlockSpec((1, C_last, TL), lambda b, t: (b, 0, t)),
        scratch_shapes=scratch,
        compiler_params=pltpu.CompilerParams(
            dimension_semantics=("parallel", "arbitrary"),
            vmem_limit_bytes=32 * 1024 * 1024,
        ),
    )(*args)


# ----------------------------- model build -----------------------------------

def build_params(key, num_inputs, list_channels, kernel_size):
    """Mirrors TemporalConvNet.__init__ (synthetic weights, PyTorch layouts)."""
    list_channels = list(list_channels)
    res_value = len(list_channels) % 3
    if res_value > 0:
        list_channels += [list_channels[-1]] * (3 - res_value)

    layers = []
    in_c = num_inputs
    for i, out_c in enumerate(list_channels):
        dilation = 2 ** i
        key, k1, k2 = jax.random.split(key, 3)
        # PyTorch Conv1d weight layout: (Cout, Cin, k)
        w = jax.random.normal(k1, (out_c, in_c, kernel_size), jnp.float32) * 0.01
        b = jax.random.normal(k2, (out_c,), jnp.float32) * 0.01
        layers.append(dict(w=w, b=b, dilation=dilation))
        in_c = out_c

    full = [num_inputs] + list_channels
    groups = []
    for loc in range(0, len(full) - 1, 3):
        if full[loc] != full[loc + 3]:
            key, k1, k2 = jax.random.split(key, 3)
            wd = jax.random.normal(k1, (full[loc + 3], full[loc]), jnp.float32) * 0.01
            bd = jax.random.normal(k2, (full[loc + 3],), jnp.float32) * 0.01
            ds = dict(w=wd, b=bd)
        else:
            ds = None
        groups.append(dict(layers=layers[loc:loc + 3], downsample=ds))
    return groups


# ----------------------------- pure-JAX reference ----------------------------

def ref_forward(x, groups, kernel_size):
    """Mirrors the kernel arithmetic (bf16 operands, f32 accumulate/epilogue)."""
    k = kernel_size
    h_all = x.astype(jnp.float32)
    for g in groups:
        x_res = h_all
        h = h_all
        for layer in g["layers"]:
            d = layer["dilation"]
            pad = (k - 1) * d
            B, C, L = h.shape
            hp = jnp.pad(h, ((0, 0), (0, 0), (pad, 0)))
            w = layer["w"].astype(COMPUTE_DTYPE)          # (Cout, Cin, k)
            y = jnp.zeros((B, w.shape[0], L), jnp.float32)
            for j in range(k):
                xs = hp[:, :, j * d:j * d + L].astype(COMPUTE_DTYPE)
                y = y + jnp.einsum("oc,bcl->bol", w[:, :, j], xs,
                                   preferred_element_type=jnp.float32)
            h = jnp.maximum(y + layer["b"][None, :, None], 0.0)
        if g["downsample"] is not None:
            wd = g["downsample"]["w"].astype(COMPUTE_DTYPE)
            res = jnp.einsum("oc,bcl->bol", wd, x_res.astype(COMPUTE_DTYPE),
                             preferred_element_type=jnp.float32)
            res = res + g["downsample"]["b"][None, :, None]
        else:
            res = x_res
        h_all = jnp.maximum(h + res, 0.0)
    return h_all


if __name__ == "__main__":
    key = jax.random.PRNGKey(0)
    key, kx, kp = jax.random.split(key, 3)

    B, num_inputs, L = 2, 4, 256
    list_channels = [8, 8, 4, 8, 8, 8]   # two groups: identity residual + downsampled
    kernel_size = 2

    x = jax.random.normal(kx, (B, num_inputs, L), jnp.float32)   # (B, C, L)
    groups = build_params(kp, num_inputs, list_channels, kernel_size)

    # tl=128 -> 2 L-tiles per batch row, exercising the streaming history carry
    out = jax.block_until_ready(tcn_forward(x, groups, kernel_size=kernel_size, tl=128))
    ref = jax.block_until_ready(ref_forward(x, groups, kernel_size))

    np.testing.assert_allclose(np.asarray(out), np.asarray(ref), rtol=2e-3, atol=2e-3)
    assert out.shape == (B, list_channels[-1], L)

    print("KERNEL_OK")
</pallas_src>

<mosaic_0001>
module attributes {stable_mosaic.version = 11 : i64} {
  func.func @_tcn_kernel(%arg0: i32, %arg1: i32, %arg2: memref<1x4x128xf32, #tpu.memory_space<vmem>>, %arg3: memref<8x8xbf16, #tpu.memory_space<vmem>>, %arg4: memref<8x1xf32, #tpu.memory_space<vmem>>, %arg5: memref<8x16xbf16, #tpu.memory_space<vmem>>, %arg6: memref<8x1xf32, #tpu.memory_space<vmem>>, %arg7: memref<4x16xbf16, #tpu.memory_space<vmem>>, %arg8: memref<4x1xf32, #tpu.memory_space<vmem>>, %arg9: memref<8x8xbf16, #tpu.memory_space<vmem>>, %arg10: memref<8x1xf32, #tpu.memory_space<vmem>>, %arg11: memref<8x16xbf16, #tpu.memory_space<vmem>>, %arg12: memref<8x1xf32, #tpu.memory_space<vmem>>, %arg13: memref<8x16xbf16, #tpu.memory_space<vmem>>, %arg14: memref<8x1xf32, #tpu.memory_space<vmem>>, %arg15: memref<8x4xbf16, #tpu.memory_space<vmem>>, %arg16: memref<8x1xf32, #tpu.memory_space<vmem>>, %arg17: memref<1x8x128xf32, #tpu.memory_space<vmem>>, %arg18: memref<4x256xbf16, #tpu.memory_space<vmem>>, %arg19: memref<8x256xbf16, #tpu.memory_space<vmem>>, %arg20: memref<8x256xbf16, #tpu.memory_space<vmem>>, %arg21: memref<4x256xbf16, #tpu.memory_space<vmem>>, %arg22: memref<8x256xbf16, #tpu.memory_space<vmem>>, %arg23: memref<8x256xbf16, #tpu.memory_space<vmem>>) attributes {dimension_semantics = [#tpu.dimension_semantics<parallel>, #tpu.dimension_semantics<arbitrary>], iteration_bounds = array<i64: 2, 2>, scalar_prefetch = 0 : i64, scratch_operands = 6 : i64, tpu.core_type = #tpu.core_type<tc>, window_params = [{transform_indices = @transform_0, window_bounds = array<i64: 1, 4, 128>}, {pipeline_mode = #tpu.pipeline_mode<synchronous>, transform_indices = @transform_1, window_bounds = array<i64: 8, 8>}, {pipeline_mode = #tpu.pipeline_mode<synchronous>, transform_indices = @transform_2, window_bounds = array<i64: 8, 1>}, {pipeline_mode = #tpu.pipeline_mode<synchronous>, transform_indices = @transform_3, window_bounds = array<i64: 8, 16>}, {pipeline_mode = #tpu.pipeline_mode<synchronous>, transform_indices = @transform_4, window_bounds = array<i64: 8, 1>}, {pipeline_mode = #tpu.pipeline_mode<synchronous>, transform_indices = @transform_5, window_bounds = array<i64: 4, 16>}, {pipeline_mode = #tpu.pipeline_mode<synchronous>, transform_indices = @transform_6, window_bounds = array<i64: 4, 1>}, {pipeline_mode = #tpu.pipeline_mode<synchronous>, transform_indices = @transform_7, window_bounds = array<i64: 8, 8>}, {pipeline_mode = #tpu.pipeline_mode<synchronous>, transform_indices = @transform_8, window_bounds = array<i64: 8, 1>}, {pipeline_mode = #tpu.pipeline_mode<synchronous>, transform_indices = @transform_9, window_bounds = array<i64: 8, 16>}, {pipeline_mode = #tpu.pipeline_mode<synchronous>, transform_indices = @transform_10, window_bounds = array<i64: 8, 1>}, {pipeline_mode = #tpu.pipeline_mode<synchronous>, transform_indices = @transform_11, window_bounds = array<i64: 8, 16>}, {pipeline_mode = #tpu.pipeline_mode<synchronous>, transform_indices = @transform_12, window_bounds = array<i64: 8, 1>}, {pipeline_mode = #tpu.pipeline_mode<synchronous>, transform_indices = @transform_13, window_bounds = array<i64: 8, 4>}, {pipeline_mode = #tpu.pipeline_mode<synchronous>, transform_indices = @transform_14, window_bounds = array<i64: 8, 1>}, {transform_indices = @transform_15, window_bounds = array<i64: 1, 8, 128>}]} {
    %c0 = arith.constant 0 : index
    %c0_0 = arith.constant 0 : index
    %c0_1 = arith.constant 0 : index
    %0 = vector.load %arg2[%c0, %c0_0, %c0_1] : memref<1x4x128xf32, #tpu.memory_space<vmem>>, vector<1x4x128xf32>
    %1 = vector.shape_cast %0 : vector<1x4x128xf32> to vector<4x128xf32>
    %c0_i32 = arith.constant 0 : i32
    %2 = arith.cmpi eq, %arg1, %c0_i32 : i32
    %3 = arith.extui %2 : i1 to i32
    %c0_i32_2 = arith.constant 0 : i32
    %4 = arith.cmpi ne, %3, %c0_i32_2 : i32
    scf.if %4 {
      %cst_99 = arith.constant 0.000000e+00 : bf16
      %125 = vector.broadcast %cst_99 : bf16 to vector<4x128xbf16>
      %c0_100 = arith.constant 0 : index
      %c0_101 = arith.constant 0 : index
      %126 = vector.load %arg18[%c0_100, %c0_101] : memref<4x256xbf16, #tpu.memory_space<vmem>>, vector<4x128xbf16>
      tpu.vector_store %arg18[%c0_100, %c0_101], %125 {strides = array<i32>} : memref<4x256xbf16, #tpu.memory_space<vmem>>, vector<4x128xbf16>,
    } else {
    }
    %c0_i32_3 = arith.constant 0 : i32
    %5 = arith.cmpi sgt, %arg1, %c0_i32_3 : i32
    %6 = arith.extui %5 : i1 to i32
    %c0_i32_4 = arith.constant 0 : i32
    %7 = arith.cmpi ne, %6, %c0_i32_4 : i32
    scf.if %7 {
      %c0_99 = arith.constant 0 : index
      %c255 = arith.constant 255 : index
      %125 = vector.load %arg18[%c0_99, %c255] : memref<4x256xbf16, #tpu.memory_space<vmem>>, vector<4x1xbf16>
      %c0_100 = arith.constant 0 : index
      %c127_101 = arith.constant 127 : index
      %126 = vector.load %arg18[%c0_100, %c127_101] : memref<4x256xbf16, #tpu.memory_space<vmem>>, vector<4x1xbf16>
      tpu.vector_store %arg18[%c0_100, %c127_101], %125 {strides = array<i32>} : memref<4x256xbf16, #tpu.memory_space<vmem>>, vector<4x1xbf16>,
    } else {
    }
    %8 = arith.truncf %1 : vector<4x128xf32> to vector<4x128xbf16>
    %c0_5 = arith.constant 0 : index
    %c128 = arith.constant 128 : index
    %9 = vector.load %arg18[%c0_5, %c128] : memref<4x256xbf16, #tpu.memory_space<vmem>>, vector<4x128xbf16>
    tpu.vector_store %arg18[%c0_5, %c128], %8 {strides = array<i32>} : memref<4x256xbf16, #tpu.memory_space<vmem>>, vector<4x128xbf16>,
    %c0_6 = arith.constant 0 : index
    %c127 = arith.constant 127 : index
    %10 = vector.load %arg18[%c0_6, %c127] : memref<4x256xbf16, #tpu.memory_space<vmem>>, vector<4x128xbf16>
    %c0_7 = arith.constant 0 : index
    %c128_8 = arith.constant 128 : index
    %11 = vector.load %arg18[%c0_7, %c128_8] : memref<4x256xbf16, #tpu.memory_space<vmem>>, vector<4x128xbf16>
    %12 = tpu.concatenate %10, %11 in 0 : vector<4x128xbf16>, vector<4x128xbf16> -> vector<8x128xbf16>
    %c0_9 = arith.constant 0 : index
    %c0_10 = arith.constant 0 : index
    %13 = vector.load %arg3[%c0_9, %c0_10] : memref<8x8xbf16, #tpu.memory_space<vmem>>, vector<8x8xbf16>
    %cst = arith.constant dense<0.000000e+00> : vector<8x128xf32>
    %14 = tpu.matmul %13, %12, %cst {dimension_numbers = #tpu.dot_dimension_numbers<[1], [0], [0], [1], [0, 0, 1, 1], [], []>} : vector<8x8xbf16>, vector<8x128xbf16>, vector<8x128xf32> -> vector<8x128xf32>
    %c0_11 = arith.constant 0 : index
    %c0_12 = arith.constant 0 : index
    %15 = vector.load %arg4[%c0_11, %c0_12] : memref<8x1xf32, #tpu.memory_space<vmem>>, vector<8x1xf32>
    %16 = vector.broadcast %15 : vector<8x1xf32> to vector<8x128xf32>
    %17 = arith.addf %14, %16 : vector<8x128xf32>
    %cst_13 = arith.constant 0.000000e+00 : f32
    %18 = vector.broadcast %cst_13 : f32 to vector<8x128xf32>
    %19 = arith.maximumf %17, %18 : vector<8x128xf32>
    %c0_i32_14 = arith.constant 0 : i32
    %20 = arith.cmpi eq, %arg1, %c0_i32_14 : i32
    %21 = arith.extui %20 : i1 to i32
    %c0_i32_15 = arith.constant 0 : i32
    %22 = arith.cmpi ne, %21, %c0_i32_15 : i32
    scf.if %22 {
      %cst_99 = arith.constant 0.000000e+00 : bf16
      %125 = vector.broadcast %cst_99 : bf16 to vector<8x128xbf16>
      %c0_100 = arith.constant 0 : index
      %c0_101 = arith.constant 0 : index
      %126 = vector.load %arg19[%c0_100, %c0_101] : memref<8x256xbf16, #tpu.memory_space<vmem>>, vector<8x128xbf16>
      tpu.vector_store %arg19[%c0_100, %c0_101], %125 {strides = array<i32>} : memref<8x256xbf16, #tpu.memory_space<vmem>>, vector<8x128xbf16>,
    } else {
    }
    %c0_i32_16 = arith.constant 0 : i32
    %23 = arith.cmpi sgt, %arg1, %c0_i32_16 : i32
    %24 = arith.extui %23 : i1 to i32
    %c0_i32_17 = arith.constant 0 : i32
    %25 = arith.cmpi ne, %24, %c0_i32_17 : i32
    scf.if %25 {
      %c0_99 = arith.constant 0 : index
      %c254 = arith.constant 254 : index
      %125 = vector.load %arg19[%c0_99, %c254] : memref<8x256xbf16, #tpu.memory_space<vmem>>, vector<8x2xbf16>
      %c0_100 = arith.constant 0 : index
      %c126_101 = arith.constant 126 : index
      %126 = vector.load %arg19[%c0_100, %c126_101] : memref<8x256xbf16, #tpu.memory_space<vmem>>, vector<8x2xbf16>
      tpu.vector_store %arg19[%c0_100, %c126_101], %125 {strides = array<i32>} : memref<8x256xbf16, #tpu.memory_space<vmem>>, vector<8x2xbf16>,
    } else {
    }
    %26 = arith.truncf %19 : vector<8x128xf32> to vector<8x128xbf16>
    %c0_18 = arith.constant 0 : index
    %c128_19 = arith.constant 128 : index
    %27 = vector.load %arg19[%c0_18, %c128_19] : memref<8x256xbf16, #tpu.memory_space<vmem>>, vector<8x128xbf16>
    tpu.vector_store %arg19[%c0_18, %c128_19], %26 {strides = array<i32>} : memref<8x256xbf16, #tpu.memory_space<vmem>>, vector<8x128xbf16>,
    %c0_20 = arith.constant 0 : index
    %c126 = arith.constant 126 : index
    %28 = vector.load %arg19[%c0_20, %c126] : memref<8x256xbf16, #tpu.memory_space<vmem>>, vector<8x128xbf16>
    %c0_21 = arith.constant 0 : index
    %c128_22 = arith.constant 128 : index
    %29 = vector.load %arg19[%c0_21, %c128_22] : memref<8x256xbf16, #tpu.memory_space<vmem>>, vector<8x128xbf16>
    %30 = tpu.concatenate %28, %29 in 0 : vector<8x128xbf16>, vector<8x128xbf16> -> vector<16x128xbf16>
    %c0_23 = arith.constant 0 : index
    %c0_24 = arith.constant 0 : index
    %31 = vector.load %arg5[%c0_23, %c0_24] : memref<8x16xbf16, #tpu.memory_space<vmem>>, vector<8x16xbf16>
    %cst_25 = arith.constant dense<0.000000e+00> : vector<8x128xf32>
    %32 = tpu.matmul %31, %30, %cst_25 {dimension_numbers = #tpu.dot_dimension_numbers<[1], [0], [0], [1], [0, 0, 1, 1], [], []>} : vector<8x16xbf16>, vector<16x128xbf16>, vector<8x128xf32> -> vector<8x128xf32>
    %c0_26 = arith.constant 0 : index
    %c0_27 = arith.constant 0 : index
    %33 = vector.load %arg6[%c0_26, %c0_27] : memref<8x1xf32, #tpu.memory_space<vmem>>, vector<8x1xf32>
    %34 = vector.broadcast %33 : vector<8x1xf32> to vector<8x128xf32>
    %35 = arith.addf %32, %34 : vector<8x128xf32>
    %cst_28 = arith.constant 0.000000e+00 : f32
    %36 = vector.broadcast %cst_28 : f32 to vector<8x128xf32>
    %37 = arith.maximumf %35, %36 : vector<8x128xf32>
    %c0_i32_29 = arith.constant 0 : i32
    %38 = arith.cmpi eq, %arg1, %c0_i32_29 : i32
    %39 = arith.extui %38 : i1 to i32
    %c0_i32_30 = arith.constant 0 : i32
    %40 = arith.cmpi ne, %39, %c0_i32_30 : i32
    scf.if %40 {
      %cst_99 = arith.constant 0.000000e+00 : bf16
      %125 = vector.broadcast %cst_99 : bf16 to vector<8x128xbf16>
      %c0_100 = arith.constant 0 : index
      %c0_101 = arith.constant 0 : index
      %126 = vector.load %arg20[%c0_100, %c0_101] : memref<8x256xbf16, #tpu.memory_space<vmem>>, vector<8x128xbf16>
      tpu.vector_store %arg20[%c0_100, %c0_101], %125 {strides = array<i32>} : memref<8x256xbf16, #tpu.memory_space<vmem>>, vector<8x128xbf16>,
    } else {
    }
    %c0_i32_31 = arith.constant 0 : i32
    %41 = arith.cmpi sgt, %arg1, %c0_i32_31 : i32
    %42 = arith.extui %41 : i1 to i32
    %c0_i32_32 = arith.constant 0 : i32
    %43 = arith.cmpi ne, %42, %c0_i32_32 : i32
    scf.if %43 {
      %c0_99 = arith.constant 0 : index
      %c252 = arith.constant 252 : index
      %125 = vector.load %arg20[%c0_99, %c252] : memref<8x256xbf16, #tpu.memory_space<vmem>>, vector<8x4xbf16>
      %c0_100 = arith.constant 0 : index
      %c124_101 = arith.constant 124 : index
      %126 = vector.load %arg20[%c0_100, %c124_101] : memref<8x256xbf16, #tpu.memory_space<vmem>>, vector<8x4xbf16>
      tpu.vector_store %arg20[%c0_100, %c124_101], %125 {strides = array<i32>} : memref<8x256xbf16, #tpu.memory_space<vmem>>, vector<8x4xbf16>,
    } else {
    }
    %44 = arith.truncf %37 : vector<8x128xf32> to vector<8x128xbf16>
    %c0_33 = arith.constant 0 : index
    %c128_34 = arith.constant 128 : index
    %45 = vector.load %arg20[%c0_33, %c128_34] : memref<8x256xbf16, #tpu.memory_space<vmem>>, vector<8x128xbf16>
    tpu.vector_store %arg20[%c0_33, %c128_34], %44 {strides = array<i32>} : memref<8x256xbf16, #tpu.memory_space<vmem>>, vector<8x128xbf16>,
    %c0_35 = arith.constant 0 : index
    %c124 = arith.constant 124 : index
    %46 = vector.load %arg20[%c0_35, %c124] : memref<8x256xbf16, #tpu.memory_space<vmem>>, vector<8x128xbf16>
    %c0_36 = arith.constant 0 : index
    %c128_37 = arith.constant 128 : index
    %47 = vector.load %arg20[%c0_36, %c128_37] : memref<8x256xbf16, #tpu.memory_space<vmem>>, vector<8x128xbf16>
    %48 = tpu.concatenate %46, %47 in 0 : vector<8x128xbf16>, vector<8x128xbf16> -> vector<16x128xbf16>
    %c0_38 = arith.constant 0 : index
    %c0_39 = arith.constant 0 : index
    %49 = vector.load %arg7[%c0_38, %c0_39] : memref<4x16xbf16, #tpu.memory_space<vmem>>, vector<4x16xbf16>
    %cst_40 = arith.constant dense<0.000000e+00> : vector<4x128xf32>
    %50 = tpu.matmul %49, %48, %cst_40 {dimension_numbers = #tpu.dot_dimension_numbers<[1], [0], [0], [1], [0, 0, 1, 1], [], []>} : vector<4x16xbf16>, vector<16x128xbf16>, vector<4x128xf32> -> vector<4x128xf32>
    %c0_41 = arith.constant 0 : index
    %c0_42 = arith.constant 0 : index
    %51 = vector.load %arg8[%c0_41, %c0_42] : memref<4x1xf32, #tpu.memory_space<vmem>>, vector<4x1xf32>
    %52 = vector.broadcast %51 : vector<4x1xf32> to vector<4x128xf32>
    %53 = arith.addf %50, %52 : vector<4x128xf32>
    %cst_43 = arith.constant 0.000000e+00 : f32
    %54 = vector.broadcast %cst_43 : f32 to vector<4x128xf32>
    %55 = arith.maximumf %53, %54 : vector<4x128xf32>
    %56 = arith.addf %55, %1 : vector<4x128xf32>
    %cst_44 = arith.constant 0.000000e+00 : f32
    %57 = vector.broadcast %cst_44 : f32 to vector<4x128xf32>
    %58 = arith.maximumf %56, %57 : vector<4x128xf32>
    %c0_i32_45 = arith.constant 0 : i32
    %59 = arith.cmpi eq, %arg1, %c0_i32_45 : i32
    %60 = arith.extui %59 : i1 to i32
    %c0_i32_46 = arith.constant 0 : i32
    %61 = arith.cmpi ne, %60, %c0_i32_46 : i32
    scf.if %61 {
      %cst_99 = arith.constant 0.000000e+00 : bf16
      %125 = vector.broadcast %cst_99 : bf16 to vector<4x128xbf16>
      %c0_100 = arith.constant 0 : index
      %c0_101 = arith.constant 0 : index
      %126 = vector.load %arg21[%c0_100, %c0_101] : memref<4x256xbf16, #tpu.memory_space<vmem>>, vector<4x128xbf16>
      tpu.vector_store %arg21[%c0_100, %c0_101], %125 {strides = array<i32>} : memref<4x256xbf16, #tpu.memory_space<vmem>>, vector<4x128xbf16>,
    } else {
    }
    %c0_i32_47 = arith.constant 0 : i32
    %62 = arith.cmpi sgt, %arg1, %c0_i32_47 : i32
    %63 = arith.extui %62 : i1 to i32
    %c0_i32_48 = arith.constant 0 : i32
    %64 = arith.cmpi ne, %63, %c0_i32_48 : i32
    scf.if %64 {
      %c0_99 = arith.constant 0 : index
      %c248 = arith.constant 248 : index
      %125 = vector.load %arg21[%c0_99, %c248] : memref<4x256xbf16, #tpu.memory_space<vmem>>, vector<4x8xbf16>
      %c0_100 = arith.constant 0 : index
      %c120_101 = arith.constant 120 : index
      %126 = vector.load %arg21[%c0_100, %c120_101] : memref<4x256xbf16, #tpu.memory_space<vmem>>, vector<4x8xbf16>
      tpu.vector_store %arg21[%c0_100, %c120_101], %125 {strides = array<i32>} : memref<4x256xbf16, #tpu.memory_space<vmem>>, vector<4x8xbf16>,
    } else {
    }
    %65 = arith.truncf %58 : vector<4x128xf32> to vector<4x128xbf16>
    %c0_49 = arith.constant 0 : index
    %c128_50 = arith.constant 128 : index
    %66 = vector.load %arg21[%c0_49, %c128_50] : memref<4x256xbf16, #tpu.memory_space<vmem>>, vector<4x128xbf16>
    tpu.vector_store %arg21[%c0_49, %c128_50], %65 {strides = array<i32>} : memref<4x256xbf16, #tpu.memory_space<vmem>>, vector<4x128xbf16>,
    %c0_51 = arith.constant 0 : index
    %c120 = arith.constant 120 : index
    %67 = vector.load %arg21[%c0_51, %c120] : memref<4x256xbf16, #tpu.memory_space<vmem>>, vector<4x128xbf16>
    %c0_52 = arith.constant 0 : index
    %c128_53 = arith.constant 128 : index
    %68 = vector.load %arg21[%c0_52, %c128_53] : memref<4x256xbf16, #tpu.memory_space<vmem>>, vector<4x128xbf16>
    %69 = tpu.concatenate %67, %68 in 0 : vector<4x128xbf16>, vector<4x128xbf16> -> vector<8x128xbf16>
    %c0_54 = arith.constant 0 : index
    %c0_55 = arith.constant 0 : index
    %70 = vector.load %arg9[%c0_54, %c0_55] : memref<8x8xbf16, #tpu.memory_space<vmem>>, vector<8x8xbf16>
    %cst_56 = arith.constant dense<0.000000e+00> : vector<8x128xf32>
    %71 = tpu.matmul %70, %69, %cst_56 {dimension_numbers = #tpu.dot_dimension_numbers<[1], [0], [0], [1], [0, 0, 1, 1], [], []>} : vector<8x8xbf16>, vector<8x128xbf16>, vector<8x128xf32> -> vector<8x128xf32>
    %c0_57 = arith.constant 0 : index
    %c0_58 = arith.constant 0 : index
    %72 = vector.load %arg10[%c0_57, %c0_58] : memref<8x1xf32, #tpu.memory_space<vmem>>, vector<8x1xf32>
    %73 = vector.broadcast %72 : vector<8x1xf32> to vector<8x128xf32>
    %74 = arith.addf %71, %73 : vector<8x128xf32>
    %cst_59 = arith.constant 0.000000e+00 : f32
    %75 = vector.broadcast %cst_59 : f32 to vector<8x128xf32>
    %76 = arith.maximumf %74, %75 : vector<8x128xf32>
    %c0_i32_60 = arith.constant 0 : i32
    %77 = arith.cmpi eq, %arg1, %c0_i32_60 : i32
    %78 = arith.extui %77 : i1 to i32
    %c0_i32_61 = arith.constant 0 : i32
    %79 = arith.cmpi ne, %78, %c0_i32_61 : i32
    scf.if %79 {
      %cst_99 = arith.constant 0.000000e+00 : bf16
      %125 = vector.broadcast %cst_99 : bf16 to vector<8x128xbf16>
      %c0_100 = arith.constant 0 : index
      %c0_101 = arith.constant 0 : index
      %126 = vector.load %arg22[%c0_100, %c0_101] : memref<8x256xbf16, #tpu.memory_space<vmem>>, vector<8x128xbf16>
      tpu.vector_store %arg22[%c0_100, %c0_101], %125 {strides = array<i32>} : memref<8x256xbf16, #tpu.memory_space<vmem>>, vector<8x128xbf16>,
    } else {
    }
    %c0_i32_62 = arith.constant 0 : i32
    %80 = arith.cmpi sgt, %arg1, %c0_i32_62 : i32
    %81 = arith.extui %80 : i1 to i32
    %c0_i32_63 = arith.constant 0 : i32
    %82 = arith.cmpi ne, %81, %c0_i32_63 : i32
    scf.if %82 {
      %c0_99 = arith.constant 0 : index
      %c240 = arith.constant 240 : index
      %125 = vector.load %arg22[%c0_99, %c240] : memref<8x256xbf16, #tpu.memory_space<vmem>>, vector<8x16xbf16>
      %c0_100 = arith.constant 0 : index
      %c112_101 = arith.constant 112 : index
      %126 = vector.load %arg22[%c0_100, %c112_101] : memref<8x256xbf16, #tpu.memory_space<vmem>>, vector<8x16xbf16>
      tpu.vector_store %arg22[%c0_100, %c112_101], %125 {strides = array<i32>} : memref<8x256xbf16, #tpu.memory_space<vmem>>, vector<8x16xbf16>,
    } else {
    }
    %83 = arith.truncf %76 : vector<8x128xf32> to vector<8x128xbf16>
    %c0_64 = arith.constant 0 : index
    %c128_65 = arith.constant 128 : index
    %84 = vector.load %arg22[%c0_64, %c128_65] : memref<8x256xbf16, #tpu.memory_space<vmem>>, vector<8x128xbf16>
    tpu.vector_store %arg22[%c0_64, %c128_65], %83 {strides = array<i32>} : memref<8x256xbf16, #tpu.memory_space<vmem>>, vector<8x128xbf16>,
    %c0_66 = arith.constant 0 : index
    %c112 = arith.constant 112 : index
    %85 = vector.load %arg22[%c0_66, %c112] : memref<8x256xbf16, #tpu.memory_space<vmem>>, vector<8x128xbf16>
    %c0_67 = arith.constant 0 : index
    %c128_68 = arith.constant 128 : index
    %86 = vector.load %arg22[%c0_67, %c128_68] : memref<8x256xbf16, #tpu.memory_space<vmem>>, vector<8x128xbf16>
    %87 = tpu.concatenate %85, %86 in 0 : vector<8x128xbf16>, vector<8x128xbf16> -> vector<16x128xbf16>
    %c0_69 = arith.constant 0 : index
    %c0_70 = arith.constant 0 : index
    %88 = vector.load %arg11[%c0_69, %c0_70] : memref<8x16xbf16, #tpu.memory_space<vmem>>, vector<8x16xbf16>
    %cst_71 = arith.constant dense<0.000000e+00> : vector<8x128xf32>
    %89 = tpu.matmul %88, %87, %cst_71 {dimension_numbers = #tpu.dot_dimension_numbers<[1], [0], [0], [1], [0, 0, 1, 1], [], []>} : vector<8x16xbf16>, vector<16x128xbf16>, vector<8x128xf32> -> vector<8x128xf32>
    %c0_72 = arith.constant 0 : index
    %c0_73 = arith.constant 0 : index
    %90 = vector.load %arg12[%c0_72, %c0_73] : memref<8x1xf32, #tpu.memory_space<vmem>>, vector<8x1xf32>
    %91 = vector.broadcast %90 : vector<8x1xf32> to vector<8x128xf32>
    %92 = arith.addf %89, %91 : vector<8x128xf32>
    %cst_74 = arith.constant 0.000000e+00 : f32
    %93 = vector.broadcast %cst_74 : f32 to vector<8x128xf32>
    %94 = arith.maximumf %92, %93 : vector<8x128xf32>
    %c0_i32_75 = arith.constant 0 : i32
    %95 = arith.cmpi eq, %arg1, %c0_i32_75 : i32
    %96 = arith.extui %95 : i1 to i32
    %c0_i32_76 = arith.constant 0 : i32
    %97 = arith.cmpi ne, %96, %c0_i32_76 : i32
    scf.if %97 {
      %cst_99 = arith.constant 0.000000e+00 : bf16
      %125 = vector.broadcast %cst_99 : bf16 to vector<8x128xbf16>
      %c0_100 = arith.constant 0 : index
      %c0_101 = arith.constant 0 : index
      %126 = vector.load %arg23[%c0_100, %c0_101] : memref<8x256xbf16, #tpu.memory_space<vmem>>, vector<8x128xbf16>
      tpu.vector_store %arg23[%c0_100, %c0_101], %125 {strides = array<i32>} : memref<8x256xbf16, #tpu.memory_space<vmem>>, vector<8x128xbf16>,
    } else {
    }
    %c0_i32_77 = arith.constant 0 : i32
    %98 = arith.cmpi sgt, %arg1, %c0_i32_77 : i32
    %99 = arith.extui %98 : i1 to i32
    %c0_i32_78 = arith.constant 0 : i32
    %100 = arith.cmpi ne, %99, %c0_i32_78 : i32
    scf.if %100 {
      %c0_99 = arith.constant 0 : index
      %c224 = arith.constant 224 : index
      %125 = vector.load %arg23[%c0_99, %c224] : memref<8x256xbf16, #tpu.memory_space<vmem>>, vector<8x32xbf16>
      %c0_100 = arith.constant 0 : index
      %c96_101 = arith.constant 96 : index
      %126 = vector.load %arg23[%c0_100, %c96_101] : memref<8x256xbf16, #tpu.memory_space<vmem>>, vector<8x32xbf16>
      tpu.vector_store %arg23[%c0_100, %c96_101], %125 {strides = array<i32>} : memref<8x256xbf16, #tpu.memory_space<vmem>>, vector<8x32xbf16>,
    } else {
    }
    %101 = arith.truncf %94 : vector<8x128xf32> to vector<8x128xbf16>
    %c0_79 = arith.constant 0 : index
    %c128_80 = arith.constant 128 : index
    %102 = vector.load %arg23[%c0_79, %c128_80] : memref<8x256xbf16, #tpu.memory_space<vmem>>, vector<8x128xbf16>
    tpu.vector_store %arg23[%c0_79, %c128_80], %101 {strides = array<i32>} : memref<8x256xbf16, #tpu.memory_space<vmem>>, vector<8x128xbf16>,
    %c0_81 = arith.constant 0 : index
    %c96 = arith.constant 96 : index
    %103 = vector.load %arg23[%c0_81, %c96] : memref<8x256xbf16, #tpu.memory_space<vmem>>, vector<8x128xbf16>
    %c0_82 = arith.constant 0 : index
    %c128_83 = arith.constant 128 : index
    %104 = vector.load %arg23[%c0_82, %c128_83] : memref<8x256xbf16, #tpu.memory_space<vmem>>, vector<8x128xbf16>
    %105 = tpu.concatenate %103, %104 in 0 : vector<8x128xbf16>, vector<8x128xbf16> -> vector<16x128xbf16>
    %c0_84 = arith.constant 0 : index
    %c0_85 = arith.constant 0 : index
    %106 = vector.load %arg13[%c0_84, %c0_85] : memref<8x16xbf16, #tpu.memory_space<vmem>>, vector<8x16xbf16>
    %cst_86 = arith.constant dense<0.000000e+00> : vector<8x128xf32>
    %107 = tpu.matmul %106, %105, %cst_86 {dimension_numbers = #tpu.dot_dimension_numbers<[1], [0], [0], [1], [0, 0, 1, 1], [], []>} : vector<8x16xbf16>, vector<16x128xbf16>, vector<8x128xf32> -> vector<8x128xf32>
    %c0_87 = arith.constant 0 : index
    %c0_88 = arith.constant 0 : index
    %108 = vector.load %arg14[%c0_87, %c0_88] : memref<8x1xf32, #tpu.memory_space<vmem>>, vector<8x1xf32>
    %109 = vector.broadcast %108 : vector<8x1xf32> to vector<8x128xf32>
    %110 = arith.addf %107, %109 : vector<8x128xf32>
    %cst_89 = arith.constant 0.000000e+00 : f32
    %111 = vector.broadcast %cst_89 : f32 to vector<8x128xf32>
    %112 = arith.maximumf %110, %111 : vector<8x128xf32>
    %c0_90 = arith.constant 0 : index
    %c0_91 = arith.constant 0 : index
    %113 = vector.load %arg15[%c0_90, %c0_91] : memref<8x4xbf16, #tpu.memory_space<vmem>>, vector<8x4xbf16>
    %114 = arith.truncf %58 : vector<4x128xf32> to vector<4x128xbf16>
    %cst_92 = arith.constant dense<0.000000e+00> : vector<8x128xf32>
    %115 = tpu.matmul %113, %114, %cst_92 {dimension_numbers = #tpu.dot_dimension_numbers<[1], [0], [0], [1], [0, 0, 1, 1], [], []>} : vector<8x4xbf16>, vector<4x128xbf16>, vector<8x128xf32> -> vector<8x128xf32>
    %c0_93 = arith.constant 0 : index
    %c0_94 = arith.constant 0 : index
    %116 = vector.load %arg16[%c0_93, %c0_94] : memref<8x1xf32, #tpu.memory_space<vmem>>, vector<8x1xf32>
    %117 = vector.broadcast %116 : vector<8x1xf32> to vector<8x128xf32>
    %118 = arith.addf %115, %117 : vector<8x128xf32>
    %119 = arith.addf %112, %118 : vector<8x128xf32>
    %cst_95 = arith.constant 0.000000e+00 : f32
    %120 = vector.broadcast %cst_95 : f32 to vector<8x128xf32>
    %121 = arith.maximumf %119, %120 : vector<8x128xf32>
    %c0_96 = arith.constant 0 : index
    %c0_97 = arith.constant 0 : index
    %c0_98 = arith.constant 0 : index
    %122 = vector.load %arg17[%c0_96, %c0_97, %c0_98] : memref<1x8x128xf32, #tpu.memory_space<vmem>>, vector<1x8x128xf32>
    %123 = vector.shape_cast %122 : vector<1x8x128xf32> to vector<8x128xf32>
    %124 = vector.shape_cast %121 : vector<8x128xf32> to vector<1x8x128xf32>
    tpu.vector_store %arg17[%c0_96, %c0_97, %c0_98], %124 {strides = array<i32>} : memref<1x8x128xf32, #tpu.memory_space<vmem>>, vector<1x8x128xf32>,
    return
  }
  func.func @transform_0(%arg0: i32, %arg1: i32) -> (i32, i32, i32) {
    %c0_i32 = arith.constant 0 : i32
    %c0_i32_0 = arith.constant 0 : i32
    return %arg0, %c0_i32, %arg1 : i32, i32, i32
  }
  func.func @transform_1(%arg0: i32, %arg1: i32) -> (i32, i32) {
    %c0_i32 = arith.constant 0 : i32
    %c0_i32_0 = arith.constant 0 : i32
    %c0_i32_1 = arith.constant 0 : i32
    return %c0_i32, %c0_i32_0 : i32, i32
  }
  func.func @transform_2(%arg0: i32, %arg1: i32) -> (i32, i32) {
    %c0_i32 = arith.constant 0 : i32
    %c0_i32_0 = arith.constant 0 : i32
    %c0_i32_1 = arith.constant 0 : i32
    return %c0_i32, %c0_i32_0 : i32, i32
  }
  func.func @transform_3(%arg0: i32, %arg1: i32) -> (i32, i32) {
    %c0_i32 = arith.constant 0 : i32
    %c0_i32_0 = arith.constant 0 : i32
    %c0_i32_1 = arith.constant 0 : i32
    return %c0_i32, %c0_i32_0 : i32, i32
  }
  func.func @transform_4(%arg0: i32, %arg1: i32) -> (i32, i32) {
    %c0_i32 = arith.constant 0 : i32
    %c0_i32_0 = arith.constant 0 : i32
    %c0_i32_1 = arith.constant 0 : i32
    return %c0_i32, %c0_i32_0 : i32, i32
  }
  func.func @transform_5(%arg0: i32, %arg1: i32) -> (i32, i32) {
    %c0_i32 = arith.constant 0 : i32
    %c0_i32_0 = arith.constant 0 : i32
    %c0_i32_1 = arith.constant 0 : i32
    return %c0_i32, %c0_i32_0 : i32, i32
  }
  func.func @transform_6(%arg0: i32, %arg1: i32) -> (i32, i32) {
    %c0_i32 = arith.constant 0 : i32
    %c0_i32_0 = arith.constant 0 : i32
    %c0_i32_1 = arith.constant 0 : i32
    return %c0_i32, %c0_i32_0 : i32, i32
  }
  func.func @transform_7(%arg0: i32, %arg1: i32) -> (i32, i32) {
    %c0_i32 = arith.constant 0 : i32
    %c0_i32_0 = arith.constant 0 : i32
    %c0_i32_1 = arith.constant 0 : i32
    return %c0_i32, %c0_i32_0 : i32, i32
  }
  func.func @transform_8(%arg0: i32, %arg1: i32) -> (i32, i32) {
    %c0_i32 = arith.constant 0 : i32
    %c0_i32_0 = arith.constant 0 : i32
    %c0_i32_1 = arith.constant 0 : i32
    return %c0_i32, %c0_i32_0 : i32, i32
  }
  func.func @transform_9(%arg0: i32, %arg1: i32) -> (i32, i32) {
    %c0_i32 = arith.constant 0 : i32
    %c0_i32_0 = arith.constant 0 : i32
    %c0_i32_1 = arith.constant 0 : i32
    return %c0_i32, %c0_i32_0 : i32, i32
  }
  func.func @transform_10(%arg0: i32, %arg1: i32) -> (i32, i32) {
    %c0_i32 = arith.constant 0 : i32
    %c0_i32_0 = arith.constant 0 : i32
    %c0_i32_1 = arith.constant 0 : i32
    return %c0_i32, %c0_i32_0 : i32, i32
  }
  func.func @transform_11(%arg0: i32, %arg1: i32) -> (i32, i32) {
    %c0_i32 = arith.constant 0 : i32
    %c0_i32_0 = arith.constant 0 : i32
    %c0_i32_1 = arith.constant 0 : i32
    return %c0_i32, %c0_i32_0 : i32, i32
  }
  func.func @transform_12(%arg0: i32, %arg1: i32) -> (i32, i32) {
    %c0_i32 = arith.constant 0 : i32
    %c0_i32_0 = arith.constant 0 : i32
    %c0_i32_1 = arith.constant 0 : i32
    return %c0_i32, %c0_i32_0 : i32, i32
  }
  func.func @transform_13(%arg0: i32, %arg1: i32) -> (i32, i32) {
    %c0_i32 = arith.constant 0 : i32
    %c0_i32_0 = arith.constant 0 : i32
    %c0_i32_1 = arith.constant 0 : i32
    return %c0_i32, %c0_i32_0 : i32, i32
  }
  func.func @transform_14(%arg0: i32, %arg1: i32) -> (i32, i32) {
    %c0_i32 = arith.constant 0 : i32
    %c0_i32_0 = arith.constant 0 : i32
    %c0_i32_1 = arith.constant 0 : i32
    return %c0_i32, %c0_i32_0 : i32, i32
  }
  func.func @transform_15(%arg0: i32, %arg1: i32) -> (i32, i32, i32) {
    %c0_i32 = arith.constant 0 : i32
    %c0_i32_0 = arith.constant 0 : i32
    return %arg0, %c0_i32, %arg1 : i32, i32, i32
  }
}

</mosaic_0001>

<bundles_post_ra>
// kernel: tpu_custom_call.1
= control target key start
LH: loop header
LB: loop body
LE: loop exit
PB: predicated region body
PF: predicated region fallthrough
CT: control target
= control target key end

     0   :  { %s1606_s0 = inlined_call_operand.vmem [shape: f32[2,4,256], index: 0, kind: input, shape index: {}]   ;;  %s1607_s1 = inlined_call_operand.vmem [shape: bf16[8,8], index: 1, kind: input, shape index: {}]   ;;  %s1608_s2 = inlined_call_operand.vmem [shape: f32[8,1], index: 2, kind: input, shape index: {}]   ;;  %s1609_s3 = inlined_call_operand.vmem [shape: bf16[8,16], index: 3, kind: input, shape index: {}]   ;;  %s1610_s4 = inlined_call_operand.vmem [shape: f32[8,1], index: 4, kind: input, shape index: {}]   ;;  %s1611_s5 = inlined_call_operand.vmem [shape: bf16[4,16], index: 5, kind: input, shape index: {}]   ;;  %s1612_s6 = inlined_call_operand.vmem [shape: f32[4,1], index: 6, kind: input, shape index: {}]   ;;  %s1613_s7 = inlined_call_operand.vmem [shape: bf16[8,8], index: 7, kind: input, shape index: {}]   ;;  %s1614_s8 = inlined_call_operand.vmem [shape: f32[8,1], index: 8, kind: input, shape index: {}]   ;;  %s1615_s9 = inlined_call_operand.vmem [shape: bf16[8,16], index: 9, kind: input, shape index: {}]   ;;  %s1616_s10 = inlined_call_operand.vmem [shape: f32[8,1], index: 10, kind: input, shape index: {}]   ;;  %s1617_s11 = inlined_call_operand.vmem [shape: bf16[8,16], index: 11, kind: input, shape index: {}]   ;;  %s1618_s12 = inlined_call_operand.vmem [shape: f32[8,1], index: 12, kind: input, shape index: {}]   ;;  %s1619_s13 = inlined_call_operand.vmem [shape: bf16[8,4], index: 13, kind: input, shape index: {}]   ;;  %s1620_s14 = inlined_call_operand.vmem [shape: f32[8,1], index: 14, kind: input, shape index: {}]   ;;  %s1621_s15 = inlined_call_operand.hbm [shape: f32[2,8,256], index: 15, kind: output, shape index: {}]  }
   0x1   :  { %1630 = sst [smem:[#allocation18_spill]] %s1606_s0 }
   0x2   :  { %1631 = sst [smem:[#allocation19_spill]] %s1617_s11 }
   0x3   :  { %1632 = sst [smem:[#allocation20_spill]] %s1621_s15 }
   0x4   :  { %20 = vsyncpa [#allocation9], 0 }
   0x5   :  { %22 = vsyncpa [#allocation9 + $0x1], 0  ;;  %s1358_s18 = smov 0   ;;  %s1360_s19 = smov 0  }
   0x6   :  { %s1362_s20 = smov 0   ;;  %s1364_s21 = smov 0  }
   0x7   :  { %s1366_s22 = smov 0   ;;  %s1368_s23 = smov 0  }
   0x8   :  { %s1370_s24 = smov 0   ;;  %s1372_s25 = smov 0  }
   0x9 LB: > { %1633 = sst [smem:[#allocation11_spill]] %s1237_s20  ;;  %s1028_s26 = sadd.s32 4294967295, %s1257_s25   ;;  %s1257_s25 = sphi %s1372_s25, %s28_s25   ;;  %s1253_s24 = sphi %s1370_s24, %s1654_s24   ;;  %s1249_s23 = sphi %s1368_s23, %s1653_s23   ;;  %s1245_s22 = sphi %s1366_s22, %s1652_s22   ;;  %s1241_s21 = sphi %s1364_s21, %s1651_s21   ;;  %s1237_s20 = sphi %s1362_s20, %s1650_s20   ;;  %s1233_s19 = sphi %s1360_s19, %s1656_s19   ;;  %s1229_s18 = sphi %s1358_s18, %s1655_s18  }
   0xa   : > { %1634 = sst [smem:[#allocation12_spill]] %s1249_s23  ;;  %s1029_s27 = sadd.s32 4294967294, %s1257_s25  }
   0xb   : > { %1635 = sst [smem:[#allocation13_spill]] %s1253_s24  ;;  %s37_s28 = sadd.s32 1, %s1249_s23 }
   0xc   : > { %p38_p0 = scmp.ge.s32.totalorder %s37_s28, 2  ;;  %s40_s29 = sadd.s32 1, %s1253_s24 }
   0xd   : > { %p381_p1 = scmp.ne.s32.totalorder %s1237_s20, %s1233_s19  ;;  %p382_p2 = scmp.eq.s32.totalorder %s1028_s26, 3 }
   0xe   : > { %s1658_s28 = smov (%p38_p0, %s37_s28), 0  ;;  %s1660_s29 = smov (!%p38_p0, %s40_s29), %s1253_s24 }
   0xf   : > { %1636 = sst [smem:[#allocation14_spill]] %s1658_s28  ;;  %s367_s30 = ssub.s32 %s1249_s23, %s1658_s28 }
  0x10   : > { %p1409_p3 = por %p382_p2, %p381_p1  ;;  %p42_p4 = scmp.ge.s32.totalorder %s1660_s29, 2 }
  0x11   : > { %p387_p5 = scmp.ne.s32.totalorder %s1233_s19, %s1229_s18  ;;  %p388_p6 = scmp.eq.s32.totalorder %s1029_s27, 3 }
  0x12   : > { %p1032_p7 = scmp.ge.s32.totalorder %s1257_s25, 1  ;;  %s1662_s29 = smov (%p42_p4, %s1660_s29), 0 }
  0x13   : > { %1638 = sst [smem:[#allocation15_spill]] %s1662_s29  ;;  %p1418_p8 = por %p388_p6, %p387_p5 }
  0x14   : > { %p459_p9 = scmp.lt.s32.totalorder %s1257_s25, 5  ;;  %s366_s26 = ssub.s32 %s1253_s24, %s1662_s29 }
  0x15   : > { %s1639_s17 = scalar_select %p1418_p8, 1, 0 }
  0x16   : > { %s371_s15 = sadd.s32 1, %s1237_s20  ;;  %s368_s11 = sor.u32 %s367_s30, %s366_s26 }
  0x17   : > { %1640 = sst [smem:[#allocation16_spill]] %s1639_s17  ;;  %p460_p10 = pnand %p1032_p7, %p459_p9 }
  0x18   : > { %p369_p11 = scmp.eq.s32.totalorder %s368_s11, 0  ;;  %s1629_s27 = sand.u32 (!%p460_p10), 1, %s1233_s19  }
  0x19   : > { %463 = sbr.rel (%p460_p10) target bundleno = 2432 (0x980), region = 80  ;;  %p510_p12 = scmp.lt.s32.totalorder (!%p460_p10), %s1245_s22, 1 }
  0x1a   : > { %s1427_s28 = scalar_select %p369_p11, %s1237_s20, %s371_s15  }
  0x1b   : > { %s1433_s23 = sshll.u32 (!%p460_p10), %s1629_s27, 3  ;;  %p512_p13 = scmp.lt.s32.totalorder (!%p460_p10), %s1241_s21, 1 }
  0x1c   : > { %1641 = sst [smem:[#allocation17_spill]] %s1427_s28  ;;  %p1036_p0 = scmp.ne.s32.totalorder (!%p460_p10), %s1241_s21, 0 }
  0x1d   : > { %s1642_s0 = sld [smem:[#allocation18_spill]] (!%p460_p10) }
  0x1e   : > { %s511_s29 = scalar_select %p510_p12, %s1245_s22, 1 }
  0x1f   : > { %s513_s30 = scalar_select %p512_p13, %s1241_s21, 1 }
  0x20   : > { %s1034_s26 = sshll.u32 %s511_s29, 1  ;;  %523 = sbr.rel (%p1036_p0) target bundleno = 39 (0x27), region = 84 }
  0x21   : > { %s515_s11 = sadd.s32 %s1034_s26, %s513_s30 }
  0x22   : > { %s1035_s15 = sshll.u32 %s515_s11, 2 }
  0x23   : > { %s517_s20 = scalar_lea.vmem %s1642_s0, %s1035_s15 }
  0x24   : > { %v1441_v0 = vld [vmem:[%s517_s20] sm:$0xf] }
  0x25   : > { %v1259_v1 = vmov 0  }
  0x26   : > { %524 = vst [vmem:[#allocation2] sm:$0x3] %v1259_v1 }
  0x27 PF: > { %p1037_p1 = scmp.le.s32.totalorder %s1241_s21, 0 }
  0x29   : > { %528 = sbr.rel (%p1037_p1) target bundleno = 48 (0x30), region = 88 }
  0x2e   : > { %v529_v2 = vld [vmem:[#allocation2 + $0x2] sm:$0x3]  ;;  %vm530_vm0 = vcmask 1042424  }
  0x2f   : > { %531 = vst.msk [vmem:[#allocation2] sm:$0x3] %vm530_vm0, %v529_v2 }
  0x30 PF: > { %v532_v3 = vpack.c.bf16 %v1441_v0, %v1441_v0  ;;  %s1260_s20 = smov 127   ;;  %vm547_vm1 = vcmask 1041408   ;;  %s1261_s24 = smov 1   ;;  %v552_v12 = vld [vmem:[%s1608_s2] sm:$0xff]  ;;  %v1262_v13 = vmov 0   ;;  %vm564_vm2 = vcmask 7168  }
  0x31   : > { %1150 = vset.pattern.permute.xlu1 %v1262_v13  ;;  %1151 = vset.pattern.permute.xlu0 %v1262_v13  ;;  %vm570_vm3 = vcmask 1043456   ;;  %v551_v18 = vld [vmem:[%s1607_s1] sm:$0xf]  ;;  %vm566_vm4 = vcmask 64512  }
  0x32   : > { %533 = vst [vmem:[#allocation2 + $0x2] sm:$0x3] %v532_v3 }
  0x39   : > { %v534_v4 = vld [vmem:[#allocation2] sm:$0xf] }
  0x3a   : > { %537 = vst [vmem:[#allocation1] ss:$4 sm:$0xff] %v534_v4  ;;  %v535_v5 = vld [vmem:[#allocation2 + $0x2] sm:$0x3] }
  0x41   : > { %v538_v6 = vld.sshfl [vmem:[#allocation1] sm:$0xff pattern:$0x73625140]  ;;  %v539_v7 = vld.sshfl [vmem:[#allocation1 + $0x8] sm:$0xff pattern:$0x73625140] }
  0x42   : > { %542 = vst [vmem:[#allocation1 + $0x1] ss:$4 sm:$0xff] %v535_v5 }
  0x49   : > { %v543_v8 = vld.sshfl [vmem:[#allocation1] sm:$0xff pattern:$0x73625140] }
  0x4a   : > { %545 = vrot.lane.b32.xlu0 %v543_v8, %s1260_s20 }
  0xbc   : > { %v546_v9 = vpop.permute.xlu0 %545 }
  0xbd   : > { %v550_v10 = vsel %vm547_vm1, %v539_v7, %v546_v9  ;;  %v549_v11 = vsel %vm547_vm1, %v538_v6, %v546_v9 }
  0xbe   : > { %562 = vrot.lane.b32.xlu1 %v550_v10, %s1261_s24  ;;  %560 = vrot.lane.b32.xlu0 %v549_v11, %s1261_s24 }
  0xc6   : > { %555 = vperm.xlu1 %1150, %v552_v12  }
 0x130   : > { %v563_v14 = vpop.permute.xlu1 %562  ;;  %v561_v15 = vpop.permute.xlu0 %560 }
 0x131   : > { %v565_v16 = vsel %vm564_vm2, %v561_v15, %v563_v14 }
 0x132   : > { %v572_v17 = vsel %vm570_vm3, %v565_v16, 0 }
 0x133   : > { %581 = vmatpush.bf16.msra.mxu0 %v572_v17 }
 0x136   : > { %1038 = vmatmul.msk.bf16.vlgmr.msra.gmra.mxu0 %vm566_vm4, %v551_v18 }
 0x138   : > { %v556_v19 = vpop.permute.xlu1 %555 }
 0x1b3   : > { %v583_v20 = vpop.f32.mrf.mxu0 }
 0x1b4   : > { %v584_v21 = vadd.f32 %v583_v20, %v556_v19 }
 0x1b6   : > { %v587_v22 = vmax.f32 %v584_v21, 0.0 }
 0x1b7   : > { %590 = sbr.rel (%p1036_p0) target bundleno = 446 (0x1be), region = 92 }
 0x1bb   : > { %v585_v23 = vpop.f32.mrf.mxu0 }
 0x1bc   : > { %v1263_v24 = vmov 0  }
 0x1bd   : > { %591 = vst [vmem:[#allocation3] sm:$0xf] %v1263_v24 }
 0x1be PF: > { %594 = sbr.rel (%p1037_p1) target bundleno = 453 (0x1c5), region = 96 }
 0x1c3   : > { %v595_v25 = vld [vmem:[#allocation3 + $0x4] sm:$0xf]  ;;  %vm596_vm5 = vcmask 1044464  }
 0x1c4   : > { %597 = vst.msk [vmem:[#allocation3] sm:$0xf] %vm596_vm5, %v595_v25 }
 0x1c5 PF: > { %v598_v26 = vpack.c.bf16 %v587_v22, %v587_v22  ;;  %1152 = vset.pattern.permute.xlu1 %v1262_v13  ;;  %1153 = vset.pattern.permute.xlu0 %v1262_v13  ;;  %s1264_s11 = smov 126   ;;  %s1265_s15 = smov 2   ;;  %v618_v38 = vld [vmem:[%s1610_s4] sm:$0xff]  ;;  %vm630_vm6 = vcmask 15360   ;;  %vm633_vm7 = vcmask 130048  }
 0x1c6   : > { %v617_v42 = vld [vmem:[%s1609_s3] sm:$0xf] }
 0x1c7   : > { %599 = vst [vmem:[#allocation3 + $0x4] sm:$0xf] %v598_v26 }
 0x1ce   : > { %v601_v27 = vld [vmem:[#allocation3 + $0x4] sm:$0xf] }
 0x1cf   : > { %v608_v28 = vunpack.c.l.b16 %v601_v27  ;;  %v600_v30 = vld [vmem:[#allocation3] sm:$0xff] }
 0x1d0   : > { %v604_v31 = vunpack.c.h.b16 %v600_v30  ;;  %v603_v32 = vunpack.c.l.b16 %v600_v30 }
 0x1d1   : > { %v609_v29 = vpack.c.b16 %v608_v28, %v608_v28 }
 0x1d2   : > { %v606_v33 = vpack.c.b16 %v604_v31, %v604_v31  ;;  %v605_v34 = vpack.c.b16 %v603_v32, %v603_v32 }
 0x1d3   : > { %610 = vrot.lane.b32.xlu0 %v609_v29, %s1264_s11 }
 0x245   : > { %v611_v35 = vpop.permute.xlu0 %610 }
 0x246   : > { %v616_v36 = vsel %vm570_vm3, %v606_v33, %v611_v35  ;;  %v614_v37 = vsel %vm570_vm3, %v605_v34, %v611_v35 }
 0x247   : > { %628 = vrot.lane.b32.xlu1 %v616_v36, %s1265_s15  ;;  %626 = vrot.lane.b32.xlu0 %v614_v37, %s1265_s15 }
 0x24f   : > { %621 = vperm.xlu1 %1152, %v618_v38  }
 0x2b9   : > { %v629_v39 = vpop.permute.xlu1 %628  ;;  %v627_v40 = vpop.permute.xlu0 %626 }
 0x2ba   : > { %v631_v41 = vsel %vm630_vm6, %v627_v40, %v629_v39 }
 0x2bb   : > { %644 = vmatpush.bf16.msra.mxu1 %v631_v41 }
 0x2be   : > { %1041 = vmatmul.msk.bf16.vlgmr.msra.gmra.mxu1 %vm633_vm7, %v617_v42 }
 0x2c1   : > { %v622_v43 = vpop.permute.xlu1 %621 }
 0x33b   : > { %v646_v44 = vpop.f32.mrf.mxu1 }
 0x33c   : > { %v647_v45 = vadd.f32 %v646_v44, %v622_v43 }
 0x33e   : > { %v650_v46 = vmax.f32 %v647_v45, 0.0 }
 0x33f   : > { %653 = sbr.rel (%p1036_p0) target bundleno = 838 (0x346), region = 100 }
 0x343   : > { %v648_v47 = vpop.f32.mrf.mxu1 }
 0x344   : > { %v1266_v48 = vmov 0  }
 0x345   : > { %654 = vst [vmem:[#allocation4] sm:$0xf] %v1266_v48 }
 0x346 PF: > { %657 = sbr.rel (%p1037_p1) target bundleno = 845 (0x34d), region = 104 }
 0x34b   : > { %v658_v49 = vld [vmem:[#allocation4 + $0x4] sm:$0xf]  ;;  %vm659_vm8 = vcmask 1044448  }
 0x34c   : > { %660 = vst.msk [vmem:[#allocation4] sm:$0xf] %vm659_vm8, %v658_v49 }
 0x34d PF: > { %v661_v50 = vpack.c.bf16 %v650_v46, %v650_v46  ;;  %1154 = vset.pattern.permute.xlu1 %v1262_v13  ;;  %1155 = vset.pattern.permute.xlu0 %v1262_v13  ;;  %s1267_s30 = smov 124   ;;  %s1268_s26 = smov 4   ;;  %v681_v62 = vld [vmem:[%s1612_s6] sm:$0xf]  ;;  %vm693_vm9 = vcmask 31744  }
 0x34e   : > { %v680_v3 = vld [vmem:[%s1611_s5] sm:$0x3] }
 0x34f   : > { %662 = vst [vmem:[#allocation4 + $0x4] sm:$0xf] %v661_v50 }
 0x356   : > { %v664_v51 = vld [vmem:[#allocation4 + $0x4] sm:$0xf] }
 0x357   : > { %v671_v52 = vunpack.c.l.b16 %v664_v51  ;;  %v663_v54 = vld [vmem:[#allocation4] sm:$0xff] }
 0x358   : > { %v667_v55 = vunpack.c.h.b16 %v663_v54  ;;  %v666_v56 = vunpack.c.l.b16 %v663_v54 }
 0x359   : > { %v672_v53 = vpack.c.b16 %v671_v52, %v671_v52 }
 0x35a   : > { %v669_v57 = vpack.c.b16 %v667_v55, %v667_v55  ;;  %v668_v58 = vpack.c.b16 %v666_v56, %v666_v56 }
 0x35b   : > { %673 = vrot.lane.b32.xlu0 %v672_v53, %s1267_s30 }
 0x3cd   : > { %v674_v59 = vpop.permute.xlu0 %673 }
 0x3ce   : > { %v679_v60 = vsel %vm570_vm3, %v669_v57, %v674_v59  ;;  %v677_v61 = vsel %vm570_vm3, %v668_v58, %v674_v59 }
 0x3cf   : > { %691 = vrot.lane.b32.xlu1 %v679_v60, %s1268_s26  ;;  %689 = vrot.lane.b32.xlu0 %v677_v61, %s1268_s26 }
 0x3d7   : > { %684 = vperm.xlu1 %1154, %v681_v62  }
 0x441   : > { %v692_v63 = vpop.permute.xlu1 %691  ;;  %v690_v1 = vpop.permute.xlu0 %689 }
 0x442   : > { %v694_v2 = vsel %vm693_vm9, %v690_v1, %v692_v63 }
 0x443   : > { %706 = vmatpush.bf16.msra.mxu2 %v694_v2 }
 0x446   : > { %1044 = vmatmul.msk.bf16.vlgmr.msra.gmra.mxu2 %vm633_vm7, %v680_v3 }
 0x449   : > { %v685_v4 = vpop.permute.xlu1 %684 }
 0x4c9   : > { %v708_v5 = vpop.f32.mrf.mxu2 }
 0x4ca   : > { %v709_v6 = vadd.f32 %v708_v5, %v685_v4 }
 0x4cc   : > { %v712_v7 = vmax.f32 %v709_v6, 0.0 }
 0x4cd   : > { %717 = sbr.rel (%p1036_p0) target bundleno = 1236 (0x4d4), region = 108 }
 0x4ce   : > { %v713_v8 = vadd.f32 %v712_v7, %v1441_v0 }
 0x4d0   : > { %v714_v9 = vmax.f32 %v713_v8, 0.0 }
 0x4d1   : > { %v710_v10 = vpop.f32.mrf.mxu2 }
 0x4d2   : > { %v1269_v11 = vmov 0  }
 0x4d3   : > { %718 = vst [vmem:[#allocation5] sm:$0x3] %v1269_v11 }
 0x4d4 PF: > { %721 = sbr.rel (%p1037_p1) target bundleno = 1243 (0x4db), region = 112 }
 0x4d9   : > { %v722_v12 = vld [vmem:[#allocation5 + $0x2] sm:$0x3]  ;;  %vm723_vm10 = vcmask 1042368  }
 0x4da   : > { %724 = vst.msk [vmem:[#allocation5] sm:$0x3] %vm723_vm10, %v722_v12 }
 0x4db PF: > { %v1500_v14 = vpack.c.bf16 %v714_v9, %v714_v9  ;;  %1156 = vset.pattern.permute.xlu1 %v1262_v13  ;;  %1157 = vset.pattern.permute.xlu0 %v1262_v13  ;;  %s1270_s28 = smov 120   ;;  %s1271_s29 = smov 8   ;;  %v744_v22 = vld [vmem:[%s1614_s8] sm:$0xff] }
 0x4dc   : > { %v743_v27 = vld [vmem:[%s1613_s7] sm:$0xf] }
 0x4dd   : > { %726 = vst [vmem:[#allocation5 + $0x2] sm:$0x3] %v1500_v14 }
 0x4e4   : > { %v727_v0 = vld [vmem:[#allocation5] sm:$0xf] }
 0x4e5   : > { %730 = vst [vmem:[#allocation1] ss:$4 sm:$0xff] %v727_v0  ;;  %v728_v15 = vld [vmem:[#allocation5 + $0x2] sm:$0x3] }
 0x4ec   : > { %v731_v16 = vld.sshfl [vmem:[#allocation1] sm:$0xff pattern:$0x73625140]  ;;  %v732_v17 = vld.sshfl [vmem:[#allocation1 + $0x8] sm:$0xff pattern:$0x73625140] }
 0x4ed   : > { %735 = vst [vmem:[#allocation1 + $0x1] ss:$4 sm:$0xff] %v728_v15 }
 0x4f4   : > { %v736_v18 = vld.sshfl [vmem:[#allocation1] sm:$0xff pattern:$0x73625140] }
 0x4f5   : > { %738 = vrot.lane.b32.xlu0 %v736_v18, %s1270_s28 }
 0x567   : > { %v739_v19 = vpop.permute.xlu0 %738 }
 0x568   : > { %v742_v20 = vsel %vm547_vm1, %v732_v17, %v739_v19  ;;  %v741_v21 = vsel %vm547_vm1, %v731_v16, %v739_v19 }
 0x569   : > { %754 = vrot.lane.b32.xlu1 %v742_v20, %s1271_s29  ;;  %752 = vrot.lane.b32.xlu0 %v741_v21, %s1271_s29 }
 0x571   : > { %747 = vperm.xlu1 %1156, %v744_v22  }
 0x5db   : > { %v755_v23 = vpop.permute.xlu1 %754  ;;  %v753_v24 = vpop.permute.xlu0 %752 }
 0x5dc   : > { %v757_v25 = vsel %vm566_vm4, %v753_v24, %v755_v23 }
 0x5dd   : > { %v762_v26 = vsel %vm570_vm3, %v757_v25, 0 }
 0x5de   : > { %771 = vmatpush.bf16.msra.mxu3 %v762_v26 }
 0x5e1   : > { %1047 = vmatmul.msk.bf16.vlgmr.msra.gmra.mxu3 %vm566_vm4, %v743_v27 }
 0x5e3   : > { %v748_v28 = vpop.permute.xlu1 %747 }
 0x664   : > { %v773_v29 = vpop.f32.mrf.mxu3 }
 0x665   : > { %v774_v30 = vadd.f32 %v773_v29, %v748_v28 }
 0x667   : > { %v777_v31 = vmax.f32 %v774_v30, 0.0 }
 0x668   : > { %780 = sbr.rel (%p1036_p0) target bundleno = 1647 (0x66f), region = 116 }
 0x66c   : > { %v775_v32 = vpop.f32.mrf.mxu3 }
 0x66d   : > { %v1272_v33 = vmov 0  }
 0x66e   : > { %781 = vst [vmem:[#allocation6] sm:$0xf] %v1272_v33 }
 0x66f PF: > { %784 = sbr.rel (%p1037_p1) target bundleno = 1654 (0x676), region = 120 }
 0x674   : > { %v785_v34 = vld [vmem:[#allocation6 + $0x4] sm:$0xf]  ;;  %vm786_vm11 = vcmask 1044352  }
 0x675   : > { %787 = vst.msk [vmem:[#allocation6] sm:$0xf] %vm786_vm11, %v785_v34 }
 0x676 PF: > { %v788_v35 = vpack.c.bf16 %v777_v31, %v777_v31  ;;  %1158 = vset.pattern.permute.xlu1 %v1262_v13  ;;  %1159 = vset.pattern.permute.xlu0 %v1262_v13  ;;  %s1273_s20 = smov 112   ;;  %s1274_s24 = smov 16   ;;  %v808_v47 = vld [vmem:[%s1616_s10] sm:$0xff] }
 0x677   : > { %v807_v51 = vld [vmem:[%s1615_s9] sm:$0xf] }
 0x678   : > { %789 = vst [vmem:[#allocation6 + $0x4] sm:$0xf] %v788_v35 }
 0x67f   : > { %v791_v36 = vld [vmem:[#allocation6 + $0x4] sm:$0xf] }
 0x680   : > { %v798_v37 = vunpack.c.l.b16 %v791_v36  ;;  %v790_v39 = vld [vmem:[#allocation6] sm:$0xff] }
 0x681   : > { %v794_v40 = vunpack.c.h.b16 %v790_v39  ;;  %v793_v41 = vunpack.c.l.b16 %v790_v39 }
 0x682   : > { %v799_v38 = vpack.c.b16 %v798_v37, %v798_v37 }
 0x683   : > { %v796_v42 = vpack.c.b16 %v794_v40, %v794_v40  ;;  %v795_v43 = vpack.c.b16 %v793_v41, %v793_v41 }
 0x684   : > { %800 = vrot.lane.b32.xlu0 %v799_v38, %s1273_s20 }
 0x6f6   : > { %v801_v44 = vpop.permute.xlu0 %800 }
 0x6f7   : > { %v806_v45 = vsel %vm570_vm3, %v796_v42, %v801_v44  ;;  %v804_v46 = vsel %vm570_vm3, %v795_v43, %v801_v44 }
 0x6f8   : > { %818 = vrot.lane.b32.xlu1 %v806_v45, %s1274_s24  ;;  %816 = vrot.lane.b32.xlu0 %v804_v46, %s1274_s24 }
 0x700   : > { %811 = vperm.xlu1 %1158, %v808_v47  }
 0x76a   : > { %v819_v48 = vpop.permute.xlu1 %818  ;;  %v817_v49 = vpop.permute.xlu0 %816 }
 0x76b   : > { %v821_v50 = vsel %vm633_vm7, %v817_v49, %v819_v48 }
 0x76c   : > { %833 = vmatpush.bf16.msrb.mxu0 %v821_v50 }
 0x76f   : > { %1050 = vmatmul.msk.bf16.vlgmr.msrb.gmra.mxu0 %vm633_vm7, %v807_v51 }
 0x772   : > { %v812_v52 = vpop.permute.xlu1 %811 }
 0x7ec   : > { %v835_v53 = vpop.f32.mrf.mxu0 }
 0x7ed   : > { %v836_v54 = vadd.f32 %v835_v53, %v812_v52 }
 0x7ef   : > { %v839_v55 = vmax.f32 %v836_v54, 0.0 }
 0x7f0   : > { %842 = sbr.rel (%p1036_p0) target bundleno = 2039 (0x7f7), region = 124 }
 0x7f4   : > { %v837_v56 = vpop.f32.mrf.mxu0 }
 0x7f5   : > { %v1275_v57 = vmov 0  }
 0x7f6   : > { %843 = vst [vmem:[#allocation7] sm:$0xf] %v1275_v57 }
 0x7f7 PF: > { %846 = sbr.rel (%p1037_p1) target bundleno = 2046 (0x7fe), region = 128 }
 0x7fc   : > { %v847_v58 = vld [vmem:[#allocation7 + $0x4] sm:$0xf]  ;;  %vm848_vm12 = vcmask 1044224  }
 0x7fd   : > { %849 = vst.msk [vmem:[#allocation7] sm:$0xf] %vm848_vm12, %v847_v58 }
 0x7fe PF: > { %v850_v59 = vpack.c.bf16 %v839_v55, %v839_v55  ;;  %1160 = vset.pattern.permute.xlu1 %v1262_v13  ;;  %1161 = vset.pattern.permute.xlu2 %v1262_v13  ;;  %s1276_s11 = smov 96   ;;  %v914_v63 = vsel %vm547_vm1, %v1500_v14, 0  ;;  %v902_v1 = vld [vmem:[%s1619_s13] sm:$0xf]  ;;  %s1277_s24 = smov 32   ;;  %vm882_vm13 = vcmask 261120  }
 0x7ff   : > { %1162 = vset.pattern.permute.xlu0 %v1262_v13  ;;  %923 = vmatpush.bf16.msrb.mxu2 %v914_v63  ;;  %v870_v9 = vld [vmem:[%s1618_s12] sm:$0xff]  ;;  %s1643_s20 = sld [smem:[#allocation19_spill]] }
 0x800   : > { %851 = vst [vmem:[#allocation7 + $0x4] sm:$0xf] %v850_v59  ;;  %v903_v10 = vld [vmem:[%s1620_s14] sm:$0xff]  ;;  %s1644_s27 = sld [smem:[#allocation20_spill]] }
 0x801   : > { %906 = vperm.xlu2 %1161, %v903_v10  }
 0x802   : > { %1054 = vmatmul.msk.bf16.vlgmr.msrb.gmra.mxu2 %vm693_vm9, %v902_v1 }
 0x805   : > { %v869_v16 = vld [vmem:[%s1643_s20] sm:$0xf] }
 0x807   : > { %v853_v60 = vld [vmem:[#allocation7 + $0x4] sm:$0xf] }
 0x808   : > { %v860_v61 = vunpack.c.l.b16 %v853_v60  ;;  %v852_v2 = vld [vmem:[#allocation7] sm:$0xff] }
 0x809   : > { %v856_v3 = vunpack.c.h.b16 %v852_v2  ;;  %v855_v4 = vunpack.c.l.b16 %v852_v2 }
 0x80a   : > { %v861_v62 = vpack.c.b16 %v860_v61, %v860_v61 }
 0x80b   : > { %v858_v13 = vpack.c.b16 %v856_v3, %v856_v3  ;;  %v857_v5 = vpack.c.b16 %v855_v4, %v855_v4 }
 0x80c   : > { %862 = vrot.lane.b32.xlu0 %v861_v62, %s1276_s11  ;;  %s1645_s11 = scalar_lea.vmem [#allocation8], %s1433_s23 }
 0x80d   : > { %s947_s15 = sshll.u32 %s1645_s11, 4  ;;  %s948_s15 = int_to_ptr.vmem [resolvable:$true] %s947_s15 }
 0x85b   : > { %v907_v18 = vpop.permute.xlu2 %906 }
 0x87e   : > { %v863_v6 = vpop.permute.xlu0 %862 }
 0x87f   : > { %v868_v7 = vsel %vm570_vm3, %v858_v13, %v863_v6  ;;  %v866_v8 = vsel %vm570_vm3, %v857_v5, %v863_v6 }
 0x880   : > { %880 = vrot.lane.b32.xlu1 %v868_v7, %s1277_s24  ;;  %878 = vrot.lane.b32.xlu0 %v866_v8, %s1277_s24  ;;  %s1056_s24 = sshll.u32 %s1245_s22, 1  ;;  %s1647_s22 = sand.u32 1, %s1233_s19  }
 0x881   : > { %s943_s28 = sadd.s32 %s1241_s21, %s1056_s24  ;;  %s1646_s21 = smov %s1645_s11 }
 0x882   : > { %s1057_s29 = sshll.u32 %s943_s28, 3  ;;  %s933_s24 = scalar_lea.sflag [#allocation9], %s1647_s22 }
 0x883   : > { %s945_s17 = scalar_lea.hbm %s1644_s27, %s1057_s29 }
 0x884   : > { %s949_s20 = sshll.u32 %s945_s17, 4  ;;  %s1183_s17 = scalar_lea.hbm %s1644_s27, 32  ;;  %s950_s20 = int_to_ptr.hbm [resolvable:$true] %s949_s20 }
 0x885   : > { %v925_v11 = vpop.f32.mrf.mxu2  ;;  %s1177_s28 = sshra.s32 %s950_s20, 4  ;;  %s1178_s28 = int_to_ptr.hbm [resolvable:$true] %s1177_s28 }
 0x886   : > { %v926_v21 = vadd.f32 %v925_v11, %v907_v18  ;;  %s1179_s0 = scalar_lea.hbm %s1178_s28, 8  ;;  %p1184_p6 = scmp.lt.s32.totalorder %s1178_s28, %s1644_s27 }
 0x887   : > { %p1180_p2 = scmp.ne.s32.totalorder %s1178_s28, %s1179_s0  ;;  %p1185_p7 = scmp.lt.s32.totalorder %s1183_s17, %s1179_s0 }
 0x888   : > { %873 = vperm.xlu1 %1160, %v870_v9  }
 0x889   : > { %p1181_p4 = pnand %p1180_p2, %p1409_p3  ;;  %p1186_p9 = por %p1185_p7, %p1184_p6 }
 0x88b   : > { %p1182_p5 = pneg %p1181_p4 }
 0x88d   : > { %v927_v12 = vpop.f32.mrf.mxu2  ;;  %p1187_p10 = pnand %p1186_p9, %p1182_p5 }
 0x8f2   : > { %v881_v14 = vpop.permute.xlu1 %880  ;;  %v879_v0 = vpop.permute.xlu0 %878 }
 0x8f3   : > { %v883_v15 = vsel %vm882_vm13, %v879_v0, %v881_v14 }
 0x8f4   : > { %895 = vmatpush.bf16.msrb.mxu1 %v883_v15 }
 0x8f7   : > { %1053 = vmatmul.msk.bf16.vlgmr.msrb.gmra.mxu1 %vm633_vm7, %v869_v16 }
 0x8fa   : > { %v874_v17 = vpop.permute.xlu1 %873 }
 0x974   : > { %v897_v19 = vpop.f32.mrf.mxu1 }
 0x975   : > { %v898_v20 = vadd.f32 %v897_v19, %v874_v17 }
 0x977   : > { %v901_v22 = vmax.f32 %v898_v20, 0.0 }
 0x979   : > { %v929_v23 = vadd.f32 %v926_v21, %v901_v22 }
 0x97b   : > { %v930_v24 = vmax.f32 %v929_v23, 0.0 }
 0x97c   : > { %v899_v25 = vpop.f32.mrf.mxu1 }
 0x97d   : > { %931 = vst [vmem:[%s1646_s21] sm:$0xff] %v930_v24 }
 0x97e   : > { %1190 = shalt.err (!%p1187_p10)
}
 0x97f   : > { %1060 = dma.vmem_to_hbm [thread:$0]  (%p1409_p3), %s948_s15, 128, %s950_s20, %s933_s24  }
 0x980 PF: > { %p1066_p11 = scmp.ge.s32.totalorder %s1257_s25, 2  ;;  %s961_s21 = sand.u32 1, %s1229_s18  }
 0x981   : > { %s962_s22 = scalar_lea.sflag [#allocation9], %s961_s21 }
 0x982   : > { %p1063_p12 = pnand %p1066_p11, %p1418_p8 }
 0x984   : > { %p1064_p13 = pneg %p1063_p12 }
 0x986   : > { %1224 = dma.done.wait (%p1064_p13), %s962_s22, 128  }
 0x987   : > { %1226 = vsyncadd (%p1064_p13), %s962_s22, 4294967168  ;;  %s28_s25 = sadd.s32 1, %s1257_s25   ;;  %s1649_s0 = sld [smem:[#allocation11_spill]] }
 0x988   : > { %p25_p0 = scmp.ge.s32.totalorder %s28_s25, 6   ;;  %s1650_s20 = sld [smem:[#allocation17_spill]] }
 0x989   : > { %s1651_s21 = sld [smem:[#allocation12_spill]]  ;;  %s1655_s18 = smov %s1233_s19 }
 0x98a   : > { %s1652_s22 = sld [smem:[#allocation13_spill]]  ;;  %27 = sbr.rel (!%p25_p0) target bundleno = 9 (0x9), region = 165 }
 0x98b   : > { %s1653_s23 = sld [smem:[#allocation14_spill]] }
 0x98c   : > { %s1654_s24 = sld [smem:[#allocation15_spill]] }
 0x98d   : > { %s1656_s19 = smov %s1649_s0 }
 0x98f   :  { %968 = vsyncpa [#allocation9], 1 }
 0x990   :  { %970 = vsyncpa [#allocation9 + $0x1], 1 }

</bundles_post_ra>
